<compile_context>
chip_gen: v6e
topology: v6e:2x2x1
jax: 0.10.0
libtpu: 0.0.40
codegen_flags: <defaults>
</compile_context>

<pallas_src>
import functools

import jax
import jax.numpy as jnp
from jax.experimental import pallas as pl
from jax.experimental.pallas import tpu as pltpu


def _round_up(x, m):
    return (x + m - 1) // m * m


def _rep_kernel(tok_ref, tbl_ref, b_ref, o_ref, acc_ref, *, inv_len, seq_len):
    # tok_ref: (TB, L)   int32    token ids for this batch tile
    # tbl_ref: (TV, Op)  f32/bf16 pre-fused table chunk (pad(emb @ fc_w.T))
    # b_ref:   (1, Op)   f32      padded fc bias
    # o_ref:   (TB, Op)  f32      lane-dense output slab (resident over vocab axis)
    # acc_ref: (TB, Op)  f32      accumulator scratch
    v = pl.program_id(1)

    @pl.when(v == 0)
    def _():
        acc_ref[...] = jnp.zeros_like(acc_ref)

    TB = tok_ref.shape[0]
    TV = tbl_ref.shape[0]

    tok = tok_ref[...]                                                    # (TB, L)
    lane = jax.lax.broadcasted_iota(jnp.int32, (TB, TV), 1) + v * TV      # global vocab ids

    # 2-D histogram accumulation over L -- never materializes (TB, L, V).
    counts = jnp.zeros((TB, TV), jnp.float32)
    for l in range(seq_len):            # L == max_len: small, static trip count
        counts = counts + (tok[:, l:l + 1] == lane).astype(jnp.float32)

    # gather + mean over L  ==  (histogram @ fused_table) / L   (exact)
    acc_ref[...] += jnp.dot(counts.astype(tbl_ref.dtype), tbl_ref[...],
                            preferred_element_type=jnp.float32)

    @pl.when(v == pl.num_programs(1) - 1)
    def _():
        o_ref[...] = (acc_ref[...] * inv_len + b_ref[...]).astype(o_ref.dtype)


def prepare_representation_params(emb_table, fc_w, fc_b, *, vocab_tile=512,
                                  table_dtype=jnp.float32):
    """Pad + pre-fuse the parameters ONCE (outside the per-call path).

    Returns (fused_p, bias_p, meta) with fused_p = pad(emb_table @ fc_w.T).
    table_dtype=jnp.bfloat16 halves VMEM/HBM for the table on v6e/v7x
    (histogram counts stay exact; table values lose mantissa bits).
    """
    V, E = emb_table.shape
    O = fc_w.shape[0]
    Op = _round_up(O, 128)
    TV = min(_round_up(V, 128), _round_up(vocab_tile, 128))
    Vp = _round_up(V, TV)

    fused = jnp.dot(emb_table.astype(jnp.float32), fc_w.astype(jnp.float32).T,
                    precision=jax.lax.Precision.HIGHEST)                   # (V, O)
    fused_p = jnp.zeros((Vp, Op), table_dtype).at[:V, :O].set(fused.astype(table_dtype))
    bias_p = jnp.zeros((1, Op), jnp.float32).at[0, :O].set(fc_b.astype(jnp.float32))
    meta = dict(out_dim=O, vocab_tile=TV)
    return fused_p, bias_p, meta


def representation_forward(tokens, fused_p, bias_p, meta, *, batch_tile=128):
    """Per-call forward.  tokens: (B, L) integer ids; returns (B, out_dim) f32."""
    B, L = tokens.shape
    Vp, Op = fused_p.shape
    O = meta["out_dim"]
    TV = meta["vocab_tile"]

    # Batch tiling: multiples of 8 rows; ensure >=2 grid steps when B >= 16 so
    # both TensorCores get work on v7x (single-TC chips are unaffected).
    Bp8 = _round_up(B, 8)
    TB = min(Bp8, batch_tile)
    if Bp8 // TB < 2 and Bp8 >= 16:
        TB = _round_up(Bp8 // 2, 8)
    Bp = _round_up(B, TB)

    tok_p = jnp.zeros((Bp, L), jnp.int32).at[:B, :].set(tokens.astype(jnp.int32))

    n_bt = Bp // TB
    n_vt = Vp // TV

    tbl_bytes = TV * Op * fused_p.dtype.itemsize
    vmem_need = (2 * TB * L * 4          # token tile (double-buffered)
                 + 2 * tbl_bytes         # fused-table chunk (double-buffered)
                 + 2 * Op * 4            # bias
                 + 2 * TB * Op * 4       # output tile
                 + TB * Op * 4)          # accumulator scratch
    vmem_limit = int(min(max(2 * vmem_need, 16 << 20), 48 << 20))

    cost = pl.CostEstimate(
        flops=2 * Bp * Vp * Op + 2 * Bp * L * Vp,
        transcendentals=0,
        bytes_accessed=(Bp * L * 4 + Vp * Op * fused_p.dtype.itemsize
                        + Op * 4 + Bp * Op * 4),
    )

    out = pl.pallas_call(
        functools.partial(_rep_kernel, inv_len=1.0 / L, seq_len=L),
        out_shape=jax.ShapeDtypeStruct((Bp, Op), jnp.float32),
        grid_spec=pltpu.PrefetchScalarGridSpec(
            num_scalar_prefetch=0,
            grid=(n_bt, n_vt),
            in_specs=[
                pl.BlockSpec((TB, L), lambda i, v: (i, 0)),    # token ids per batch tile
                pl.BlockSpec((TV, Op), lambda i, v: (v, 0)),   # fused table chunk (streamed)
                pl.BlockSpec((1, Op), lambda i, v: (0, 0)),    # bias (resident)
            ],
            out_specs=pl.BlockSpec((TB, Op), lambda i, v: (i, 0)),
            scratch_shapes=[pltpu.VMEM((TB, Op), jnp.float32)],
        ),
        compiler_params=pltpu.CompilerParams(
            dimension_semantics=("parallel", "arbitrary"),
            vmem_limit_bytes=vmem_limit,
        ),
        cost_estimate=cost,
    )(tok_p, fused_p, bias_p)

    return out[:B, :O]


if __name__ == "__main__":
    # Config consistent with the module: forward implies hidden_dim == embedding_dim.
    VOCAB = 64          # len(vocab)
    EMB_DIM = 32        # embedding_dim == hidden_dim (LSTM is skipped by forward)
    OUT_DIM = 16        # out_dim
    MAX_LEN = 8         # max_len (== sequence length fed to AvgPool1d)
    BATCH = 2

    key = jax.random.PRNGKey(0)
    k_emb, k_w, k_b, k_tok = jax.random.split(key, 4)

    emb_table = jax.random.normal(k_emb, (VOCAB, EMB_DIM), dtype=jnp.float32) * 0.1
    emb_table = emb_table.at[0].set(0.0)                        # padding_idx=0
    fc_w = jax.random.normal(k_w, (OUT_DIM, EMB_DIM), dtype=jnp.float32) * 0.1
    fc_b = jax.random.normal(k_b, (OUT_DIM,), dtype=jnp.float32) * 0.1

    # Example tokens (includes padding id 0).
    tokens = jax.random.randint(k_tok, (BATCH, MAX_LEN), 0, VOCAB, dtype=jnp.int32)

    # Parameters are padded/fused once, outside the per-call path.
    fused_p, bias_p, meta = prepare_representation_params(emb_table, fc_w, fc_b)
    out = representation_forward(tokens, fused_p, bias_p, meta)
    out = jax.block_until_ready(out)

    # Pure-JAX reference (gather -> fc -> mean), matching the PyTorch forward.
    ref_emb = emb_table[tokens]                                            # (B, L, E)
    ref_fc = jnp.dot(ref_emb, fc_w.T,
                     precision=jax.lax.Precision.HIGHEST) + fc_b           # (B, L, O)
    ref = jnp.mean(ref_fc, axis=1)                                         # (B, O)

    assert out.shape == (BATCH, OUT_DIM)
    assert jnp.allclose(out, ref, atol=1e-5, rtol=1e-5), (out, ref)

    print("KERNEL_OK")
</pallas_src>

<mosaic_0001>
module attributes {stable_mosaic.version = 11 : i64} {
  func.func @_rep_kernel(%arg0: i32, %arg1: i32, %arg2: memref<8x8xi32, #tpu.memory_space<vmem>>, %arg3: memref<128x128xf32, #tpu.memory_space<vmem>>, %arg4: memref<1x128xf32, #tpu.memory_space<vmem>>, %arg5: memref<8x128xf32, #tpu.memory_space<vmem>>, %arg6: memref<8x128xf32, #tpu.memory_space<vmem>>) attributes {dimension_semantics = [#tpu.dimension_semantics<parallel>, #tpu.dimension_semantics<arbitrary>], iteration_bounds = array<i64: 1, 1>, scalar_prefetch = 0 : i64, scratch_operands = 1 : i64, tpu.core_type = #tpu.core_type<tc>, window_params = [{transform_indices = @transform_0, window_bounds = array<i64: 8, 8>}, {transform_indices = @transform_1, window_bounds = array<i64: 128, 128>}, {pipeline_mode = #tpu.pipeline_mode<synchronous>, transform_indices = @transform_2, window_bounds = array<i64: 1, 128>}, {transform_indices = @transform_3, window_bounds = array<i64: 8, 128>}]} {
    %c0_i32 = arith.constant 0 : i32
    %0 = arith.cmpi eq, %arg1, %c0_i32 : i32
    %1 = arith.extui %0 : i1 to i32
    %c0_i32_0 = arith.constant 0 : i32
    %2 = arith.cmpi ne, %1, %c0_i32_0 : i32
    scf.if %2 {
      %cst_11 = arith.constant 0.000000e+00 : f32
      %65 = vector.broadcast %cst_11 : f32 to vector<8x128xf32>
      %c0_12 = arith.constant 0 : index
      %c0_13 = arith.constant 0 : index
      %66 = vector.load %arg6[%c0_12, %c0_13] : memref<8x128xf32, #tpu.memory_space<vmem>>, vector<8x128xf32>
      tpu.vector_store %arg6[%c0_12, %c0_13], %65 {strides = array<i32>} : memref<8x128xf32, #tpu.memory_space<vmem>>, vector<8x128xf32>,
    } else {
    }
    %c0 = arith.constant 0 : index
    %c0_1 = arith.constant 0 : index
    %3 = vector.load %arg2[%c0, %c0_1] : memref<8x8xi32, #tpu.memory_space<vmem>>, vector<8x8xi32>
    %4 = tpu.iota {dimensions = array<i32: 1>} : vector<8x128xi32>
    %c128_i32 = arith.constant 128 : i32
    %5 = arith.muli %arg1, %c128_i32 : i32
    %6 = vector.broadcast %5 : i32 to vector<8x128xi32>
    %7 = arith.addi %4, %6 : vector<8x128xi32>
    %cst = arith.constant 0.000000e+00 : f32
    %8 = vector.broadcast %cst : f32 to vector<8x128xf32>
    %9 = vector.extract_strided_slice %3 {offsets = [0, 0], sizes = [8, 1], strides = [1, 1]} : vector<8x8xi32> to vector<8x1xi32>
    %10 = vector.broadcast %9 : vector<8x1xi32> to vector<8x128xi32>
    %11 = arith.cmpi eq, %10, %7 : vector<8x128xi32>
    %12 = arith.extui %11 : vector<8x128xi1> to vector<8x128xi32>
    %13 = arith.sitofp %12 : vector<8x128xi32> to vector<8x128xf32>
    %14 = arith.addf %8, %13 : vector<8x128xf32>
    %15 = vector.extract_strided_slice %3 {offsets = [0, 1], sizes = [8, 1], strides = [1, 1]} : vector<8x8xi32> to vector<8x1xi32>
    %16 = vector.broadcast %15 : vector<8x1xi32> to vector<8x128xi32>
    %17 = arith.cmpi eq, %16, %7 : vector<8x128xi32>
    %18 = arith.extui %17 : vector<8x128xi1> to vector<8x128xi32>
    %19 = arith.sitofp %18 : vector<8x128xi32> to vector<8x128xf32>
    %20 = arith.addf %14, %19 : vector<8x128xf32>
    %21 = vector.extract_strided_slice %3 {offsets = [0, 2], sizes = [8, 1], strides = [1, 1]} : vector<8x8xi32> to vector<8x1xi32>
    %22 = vector.broadcast %21 : vector<8x1xi32> to vector<8x128xi32>
    %23 = arith.cmpi eq, %22, %7 : vector<8x128xi32>
    %24 = arith.extui %23 : vector<8x128xi1> to vector<8x128xi32>
    %25 = arith.sitofp %24 : vector<8x128xi32> to vector<8x128xf32>
    %26 = arith.addf %20, %25 : vector<8x128xf32>
    %27 = vector.extract_strided_slice %3 {offsets = [0, 3], sizes = [8, 1], strides = [1, 1]} : vector<8x8xi32> to vector<8x1xi32>
    %28 = vector.broadcast %27 : vector<8x1xi32> to vector<8x128xi32>
    %29 = arith.cmpi eq, %28, %7 : vector<8x128xi32>
    %30 = arith.extui %29 : vector<8x128xi1> to vector<8x128xi32>
    %31 = arith.sitofp %30 : vector<8x128xi32> to vector<8x128xf32>
    %32 = arith.addf %26, %31 : vector<8x128xf32>
    %33 = vector.extract_strided_slice %3 {offsets = [0, 4], sizes = [8, 1], strides = [1, 1]} : vector<8x8xi32> to vector<8x1xi32>
    %34 = vector.broadcast %33 : vector<8x1xi32> to vector<8x128xi32>
    %35 = arith.cmpi eq, %34, %7 : vector<8x128xi32>
    %36 = arith.extui %35 : vector<8x128xi1> to vector<8x128xi32>
    %37 = arith.sitofp %36 : vector<8x128xi32> to vector<8x128xf32>
    %38 = arith.addf %32, %37 : vector<8x128xf32>
    %39 = vector.extract_strided_slice %3 {offsets = [0, 5], sizes = [8, 1], strides = [1, 1]} : vector<8x8xi32> to vector<8x1xi32>
    %40 = vector.broadcast %39 : vector<8x1xi32> to vector<8x128xi32>
    %41 = arith.cmpi eq, %40, %7 : vector<8x128xi32>
    %42 = arith.extui %41 : vector<8x128xi1> to vector<8x128xi32>
    %43 = arith.sitofp %42 : vector<8x128xi32> to vector<8x128xf32>
    %44 = arith.addf %38, %43 : vector<8x128xf32>
    %45 = vector.extract_strided_slice %3 {offsets = [0, 6], sizes = [8, 1], strides = [1, 1]} : vector<8x8xi32> to vector<8x1xi32>
    %46 = vector.broadcast %45 : vector<8x1xi32> to vector<8x128xi32>
    %47 = arith.cmpi eq, %46, %7 : vector<8x128xi32>
    %48 = arith.extui %47 : vector<8x128xi1> to vector<8x128xi32>
    %49 = arith.sitofp %48 : vector<8x128xi32> to vector<8x128xf32>
    %50 = arith.addf %44, %49 : vector<8x128xf32>
    %51 = vector.extract_strided_slice %3 {offsets = [0, 7], sizes = [8, 1], strides = [1, 1]} : vector<8x8xi32> to vector<8x1xi32>
    %52 = vector.broadcast %51 : vector<8x1xi32> to vector<8x128xi32>
    %53 = arith.cmpi eq, %52, %7 : vector<8x128xi32>
    %54 = arith.extui %53 : vector<8x128xi1> to vector<8x128xi32>
    %55 = arith.sitofp %54 : vector<8x128xi32> to vector<8x128xf32>
    %56 = arith.addf %50, %55 : vector<8x128xf32>
    %c0_2 = arith.constant 0 : index
    %c0_3 = arith.constant 0 : index
    %57 = vector.load %arg6[%c0_2, %c0_3] : memref<8x128xf32, #tpu.memory_space<vmem>>, vector<8x128xf32>
    %c0_4 = arith.constant 0 : index
    %c0_5 = arith.constant 0 : index
    %58 = vector.load %arg3[%c0_4, %c0_5] : memref<128x128xf32, #tpu.memory_space<vmem>>, vector<128x128xf32>
    %cst_6 = arith.constant dense<0.000000e+00> : vector<8x128xf32>
    %59 = tpu.matmul %56, %58, %cst_6 {dimension_numbers = #tpu.dot_dimension_numbers<[1], [0], [0], [1], [0, 0, 1, 1], [], []>} : vector<8x128xf32>, vector<128x128xf32>, vector<8x128xf32> -> vector<8x128xf32>
    %60 = arith.addf %57, %59 : vector<8x128xf32>
    %c0_7 = arith.constant 0 : index
    %c0_8 = arith.constant 0 : index
    %61 = vector.load %arg6[%c0_7, %c0_8] : memref<8x128xf32, #tpu.memory_space<vmem>>, vector<8x128xf32>
    tpu.vector_store %arg6[%c0_7, %c0_8], %60 {strides = array<i32>} : memref<8x128xf32, #tpu.memory_space<vmem>>, vector<8x128xf32>,
    %c0_i32_9 = arith.constant 0 : i32
    %62 = arith.cmpi eq, %arg1, %c0_i32_9 : i32
    %63 = arith.extui %62 : i1 to i32
    %c0_i32_10 = arith.constant 0 : i32
    %64 = arith.cmpi ne, %63, %c0_i32_10 : i32
    scf.if %64 {
      %c0_11 = arith.constant 0 : index
      %c0_12 = arith.constant 0 : index
      %65 = vector.load %arg6[%c0_11, %c0_12] : memref<8x128xf32, #tpu.memory_space<vmem>>, vector<8x128xf32>
      %cst_13 = arith.constant 1.250000e-01 : f32
      %66 = vector.broadcast %cst_13 : f32 to vector<8x128xf32>
      %67 = arith.mulf %65, %66 : vector<8x128xf32>
      %c0_14 = arith.constant 0 : index
      %c0_15 = arith.constant 0 : index
      %68 = vector.load %arg4[%c0_14, %c0_15] : memref<1x128xf32, #tpu.memory_space<vmem>>, vector<1x128xf32>
      %69 = vector.broadcast %68 : vector<1x128xf32> to vector<8x128xf32>
      %70 = arith.addf %67, %69 : vector<8x128xf32>
      %c0_16 = arith.constant 0 : index
      %c0_17 = arith.constant 0 : index
      %71 = vector.load %arg5[%c0_16, %c0_17] : memref<8x128xf32, #tpu.memory_space<vmem>>, vector<8x128xf32>
      tpu.vector_store %arg5[%c0_16, %c0_17], %70 {strides = array<i32>} : memref<8x128xf32, #tpu.memory_space<vmem>>, vector<8x128xf32>,
    } else {
    }
    return
  }
  func.func @transform_0(%arg0: i32, %arg1: i32) -> (i32, i32) {
    %c0_i32 = arith.constant 0 : i32
    %c0_i32_0 = arith.constant 0 : i32
    return %arg0, %c0_i32 : i32, i32
  }
  func.func @transform_1(%arg0: i32, %arg1: i32) -> (i32, i32) {
    %c0_i32 = arith.constant 0 : i32
    %c0_i32_0 = arith.constant 0 : i32
    return %arg1, %c0_i32 : i32, i32
  }
  func.func @transform_2(%arg0: i32, %arg1: i32) -> (i32, i32) {
    %c0_i32 = arith.constant 0 : i32
    %c0_i32_0 = arith.constant 0 : i32
    %c0_i32_1 = arith.constant 0 : i32
    return %c0_i32, %c0_i32_0 : i32, i32
  }
  func.func @transform_3(%arg0: i32, %arg1: i32) -> (i32, i32) {
    %c0_i32 = arith.constant 0 : i32
    %c0_i32_0 = arith.constant 0 : i32
    return %arg0, %c0_i32 : i32, i32
  }
}

</mosaic_0001>

<bundles_post_ra>
// kernel: tpu_custom_call.1
= control target key start
LH: loop header
LB: loop body
LE: loop exit
PB: predicated region body
PF: predicated region fallthrough
CT: control target
= control target key end

     0   :  { %8 = vsyncpa [#allocation4], 0  ;;  %s450_s0 = inlined_call_operand.hbm [shape: s32[8,8], index: 0, kind: input, shape index: {}]   ;;  %s451_s1 = inlined_call_operand.hbm [shape: f32[128,128], index: 1, kind: input, shape index: {}]   ;;  %s452_s2 = inlined_call_operand.vmem [shape: f32[1,128], index: 2, kind: input, shape index: {}]   ;;  %s453_s3 = inlined_call_operand.hbm [shape: f32[8,128], index: 3, kind: output, shape index: {}]  }
   0x1   :  { %9 = vsyncpa [#allocation7], 0 }
   0x2   :  { %10 = vsyncpa [#allocation5], 0  ;;  %s378_s12 = smov [#allocation3]   ;;  %s379_s14 = smov [#allocation6]  }
   0x3   :  { %s17_s13 = sshll.u32 %s378_s12, 4  ;;  %s26_s15 = sshll.u32 %s379_s14, 4  ;;  %s18_s13 = int_to_ptr.vmem [resolvable:$true] %s17_s13  ;;  %s27_s15 = int_to_ptr.vmem [resolvable:$true] %s26_s15 }
   0x4   :  { %s320_s16 = scalar_lea.vmem %s18_s13, 128  ;;  %p325_p1 = scmp.lt.s32.totalorder %s18_s13, %s18_s13 }
   0x5   :  { %p321_p0 = scmp.ne.s32.totalorder %s18_s13, %s320_s16  ;;  %p326_p2 = scmp.lt.s32.totalorder %s320_s16, %s320_s16 }
   0x7   :  { %p327_p3 = por %p326_p2, %p325_p1 }
   0x9   :  { %p328_p4 = pnand %p327_p3, %p321_p0 }
   0xb   :  { %331 = shalt.err (!%p328_p4)
}
   0xc   :  { %20 = dma.hbm_to_vmem [thread:$0]  %s450_s0, 128, %s18_s13, [#allocation4]  }
   0xd   :  { %s340_s19 = scalar_lea.vmem %s27_s15, 2048  ;;  %p345_p6 = scmp.lt.s32.totalorder %s27_s15, %s27_s15 }
   0xe   :  { %p341_p5 = scmp.ne.s32.totalorder %s27_s15, %s340_s19  ;;  %p346_p7 = scmp.lt.s32.totalorder %s340_s19, %s340_s19 }
  0x10   :  { %p347_p8 = por %p346_p7, %p345_p6 }
  0x12   :  { %p348_p9 = pnand %p347_p8, %p341_p5 }
  0x14   :  { %351 = shalt.err (!%p348_p9)
}
  0x15   :  { %s380_s20 = smov 128   ;;  %s381_s21 = smov 8  }
  0x16   :  { %32 = dma.hbm_to_vmem [thread:$0]  %s451_s1, 2048, %s27_s15, [#allocation7], %s380_s20, %s380_s20, %s381_s21  }
  0x17   :  { %372 = dma.done.wait [#allocation4], 128  }
  0x18   :  { %373 = vsyncadd [#allocation4], 4294967168 }
  0x19   :  { %374 = dma.done.wait [#allocation7], 2048  }
  0x1a   :  { %375 = vsyncadd [#allocation7], 4294965248  ;;  %v382_v0 = vmov 2   ;;  %v383_v1 = vmov 0   ;;  %v384_v2 = vmov 0.0   ;;  %v46_v3 = vld [vmem:[#allocation3] sm:$0xff]  ;;  %v47_v26 = vlaneseq }
  0x1b   :  { %305 = vset.pattern.permute.xlu1 %v382_v0  ;;  %303 = vset.pattern.permute.xlu0 %v383_v1  ;;  %v124_v4 = vld [vmem:[#allocation6 + $0x78] sm:$0xff]  ;;  %v123_v5 = vld [vmem:[#allocation6 + $0x70] sm:$0xff]  ;;  %v385_v6 = vmov 3   ;;  %v386_v7 = vmov 1   ;;  %v122_v8 = vld [vmem:[#allocation6 + $0x68] sm:$0xff]  ;;  %v387_v10 = vmov 4  }
  0x1c   :  { %253 = vmatprep.subr.mxu0 %v384_v2  ;;  %67 = vperm.xlu1 %305, %v46_v3   ;;  %v121_v9 = vld [vmem:[#allocation6 + $0x60] sm:$0xff]  ;;  %v388_v11 = vmov 5   ;;  %v120_v12 = vld [vmem:[#allocation6 + $0x58] sm:$0xff]  ;;  %v119_v13 = vld [vmem:[#allocation6 + $0x50] sm:$0xff]  ;;  %v389_v14 = vmov 6   ;;  %v390_v17 = vmov 7  }
  0x1d   :  { %53 = vperm.xlu0 %303, %v46_v3   ;;  %254 = vmatpush3.msra.mxu0 %v124_v4  ;;  %v118_v15 = vld [vmem:[#allocation6 + $0x48] sm:$0xff]  ;;  %v117_v16 = vld [vmem:[#allocation6 + $0x40] sm:$0xff]  ;;  %v116_v18 = vld [vmem:[#allocation6 + $0x38] sm:$0xff]  ;;  %vm391_vm0 = vmmov 0   ;;  %v48_v29 = vand.u32 127, %v47_v26  ;;  %s392_s24 = smov [#allocation8]  }
  0x1e   :  { %255 = vmatprep.subr.mxu0 %v384_v2  ;;  %v115_v19 = vld [vmem:[#allocation6 + $0x30] sm:$0xff]  ;;  %285 = vmatprep.mubr.msk.f32.mxu0 %vm391_vm0, %v384_v2  ;;  %v114_v20 = vld [vmem:[#allocation6 + $0x28] sm:$0xff]  ;;  %v113_v21 = vld [vmem:[#allocation6 + $0x20] sm:$0xff]  ;;  %s217_s25 = sshll.u32 %s392_s24, 4  ;;  %s218_s25 = int_to_ptr.vmem [resolvable:$true] %s217_s25 }
  0x1f   :  { %256 = vmatpush3.msra.mxu0 %v123_v5  ;;  %v112_v22 = vld [vmem:[#allocation6 + $0x18] sm:$0xff]  ;;  %v111_v23 = vld [vmem:[#allocation6 + $0x10] sm:$0xff]  ;;  %v110_v24 = vld [vmem:[#allocation6 + $0x8] sm:$0xff]  ;;  %s352_s26 = scalar_lea.vmem %s218_s25, 128  ;;  %p357_p11 = scmp.lt.s32.totalorder %s218_s25, %s218_s25 }
  0x20   :  { %306 = vset.pattern.permute.xlu1 %v385_v6  ;;  %257 = vmatprep.subr.mxu0 %v384_v2  ;;  %v109_v25 = vld [vmem:[#allocation6] sm:$0xff]  ;;  %v235_v52 = vld [vmem:[%s452_s2] ss:$0 sm:$0xff]  ;;  %p353_p10 = scmp.ne.s32.totalorder %s218_s25, %s352_s26  ;;  %p358_p12 = scmp.lt.s32.totalorder %s352_s26, %s352_s26 }
  0x21   :  { %304 = vset.pattern.permute.xlu0 %v386_v7  ;;  %74 = vperm.xlu1 %306, %v46_v3  }
  0x22   :  { %60 = vperm.xlu0 %304, %v46_v3   ;;  %258 = vmatpush3.msra.mxu0 %v122_v8  ;;  %p359_p13 = por %p358_p12, %p357_p11 }
  0x23   :  { %259 = vmatprep.subr.mxu0 %v384_v2 }
  0x24   :  { %260 = vmatpush3.msra.mxu0 %v121_v9  ;;  %p360_p0 = pnand %p359_p13, %p353_p10 }
  0x25   :  { %307 = vset.pattern.permute.xlu1 %v387_v10  ;;  %261 = vmatprep.subr.mxu0 %v384_v2 }
  0x26   :  { %308 = vset.pattern.permute.xlu0 %v388_v11  ;;  %81 = vperm.xlu1 %307, %v46_v3  }
  0x27   :  { %88 = vperm.xlu0 %308, %v46_v3   ;;  %262 = vmatpush3.msra.mxu0 %v120_v12 }
  0x28   :  { %263 = vmatprep.subr.mxu0 %v384_v2 }
  0x29   :  { %264 = vmatpush3.msra.mxu0 %v119_v13 }
  0x2a   :  { %309 = vset.pattern.permute.xlu1 %v389_v14  ;;  %265 = vmatprep.subr.mxu0 %v384_v2 }
  0x2b   :  { %95 = vperm.xlu1 %309, %v46_v3   ;;  %311 = vset.pattern.permute.xlu0 %v390_v17 }
  0x2c   :  { %266 = vmatpush3.msra.mxu0 %v118_v15 }
  0x2d   :  { %267 = vmatprep.subr.mxu0 %v384_v2 }
  0x2e   :  { %268 = vmatpush3.msra.mxu0 %v117_v16 }
  0x2f   :  { %310 = vset.pattern.permute.xlu1 %v390_v17  ;;  %269 = vmatprep.subr.mxu0 %v384_v2 }
  0x30   :  { %102 = vperm.xlu1 %310, %v46_v3   ;;  %270 = vmatpush3.msra.mxu0 %v116_v18 }
  0x31   :  { %271 = vmatprep.subr.mxu0 %v384_v2 }
  0x32   :  { %272 = vmatpush3.msra.mxu0 %v115_v19 }
  0x33   :  { %273 = vmatprep.subr.mxu0 %v384_v2 }
  0x34   :  { %274 = vmatpush3.msra.mxu0 %v114_v20 }
  0x35   :  { %275 = vmatprep.subr.mxu0 %v384_v2 }
  0x36   :  { %276 = vmatpush3.msra.mxu0 %v113_v21 }
  0x37   :  { %277 = vmatprep.subr.mxu0 %v384_v2 }
  0x38   :  { %278 = vmatpush3.msra.mxu0 %v112_v22 }
  0x39   :  { %279 = vmatprep.subr.mxu0 %v384_v2 }
  0x3a   :  { %280 = vmatpush3.msra.mxu0 %v111_v23 }
  0x3b   :  { %281 = vmatprep.subr.mxu0 %v384_v2 }
  0x3c   :  { %282 = vmatpush3.msra.mxu0 %v110_v24 }
  0x3d   :  { %283 = vmatprep.subr.mxu0 %v384_v2 }
  0x3e   :  { %284 = vmatpush3.msra.mxu0 %v109_v25 }
  0x97   :  { %v68_v27 = vpop.permute.xlu1 %67 }
  0x98   :  { %v54_v28 = vpop.permute.xlu0 %53  ;;  %vm69_vm2 = vcmp.eq.s32.totalorder %v68_v27, %v48_v29 }
  0x99   :  { %vm55_vm1 = vcmp.eq.s32.totalorder %v54_v28, %v48_v29  ;;  %v229_v35 = vsel %vm69_vm2, 1.0, %v384_v2 }
  0x9a   :  { %v227_v32 = vsel %vm55_vm1, 1.0, %v384_v2 }
  0x9c   :  { %v75_v30 = vpop.permute.xlu1 %74 }
  0x9d   :  { %v61_v31 = vpop.permute.xlu0 %60  ;;  %vm76_vm4 = vcmp.eq.s32.totalorder %v75_v30, %v48_v29 }
  0x9e   :  { %vm62_vm3 = vcmp.eq.s32.totalorder %v61_v31, %v48_v29  ;;  %v230_v39 = vsel %vm76_vm4, 1.0, %v384_v2 }
  0x9f   :  { %v228_v33 = vsel %vm62_vm3, 1.0, %v384_v2 }
  0xa0   :  { %v65_v34 = vadd.f32 %v228_v33, %v227_v32 }
  0xa1   :  { %v82_v37 = vpop.permute.xlu1 %81 }
  0xa2   :  { %v72_v36 = vadd.f32 %v229_v35, %v65_v34  ;;  %v89_v38 = vpop.permute.xlu0 %88  ;;  %vm83_vm5 = vcmp.eq.s32.totalorder %v82_v37, %v48_v29 }
  0xa3   :  { %vm90_vm6 = vcmp.eq.s32.totalorder %v89_v38, %v48_v29  ;;  %v231_v41 = vsel %vm83_vm5, 1.0, %v384_v2 }
  0xa4   :  { %v79_v40 = vadd.f32 %v230_v39, %v72_v36  ;;  %v232_v43 = vsel %vm90_vm6, 1.0, %v384_v2 }
  0xa6   :  { %v86_v42 = vadd.f32 %v231_v41, %v79_v40  ;;  %v96_v44 = vpop.permute.xlu1 %95 }
  0xa7   :  { %vm97_vm7 = vcmp.eq.s32.totalorder %v96_v44, %v48_v29 }
  0xa8   :  { %v93_v45 = vadd.f32 %v232_v43, %v86_v42  ;;  %v233_v46 = vsel %vm97_vm7, 1.0, %v384_v2 }
  0xaa   :  { %v100_v48 = vadd.f32 %v233_v46, %v93_v45 }
  0xab   :  { %v103_v47 = vpop.permute.xlu1 %102 }
  0xac   :  { %vm104_vm8 = vcmp.eq.s32.totalorder %v103_v47, %v48_v29 }
  0xad   :  { %v234_v49 = vsel %vm104_vm8, 1.0, %v384_v2 }
  0xae   :  { %v107_v50 = vadd.f32 %v234_v49, %v100_v48 }
  0xb0   :  { %286 = vmatmul.mubr.f32.vlgmr.msra.gmra.mxu0 %v107_v50 }
 0x170   :  { %v191_v51 = vpop.f32.mrf.mxu0 }
 0x171   :  { %v201_v53 = vmul.f32 0.125, %v191_v51 }
 0x172   :  { %v287_v54 = vpop.f32.mrf.mxu0 }
 0x173   :  { %v209_v55 = vadd.f32 %v235_v52, %v201_v53 }
 0x175   :  { %210 = vst [vmem:[#allocation8] sm:$0xff] %v209_v55 }
 0x176   :  { %363 = shalt.err (!%p360_p0)
}
 0x177   :  { %220 = dma.vmem_to_hbm [thread:$0]  %s218_s25, 128, %s453_s3, [#allocation5]  }
 0x178   :  { %376 = dma.done.wait [#allocation5], 128  }
 0x179   :  { %377 = vsyncadd [#allocation5], 4294967168 }
 0x17a   :  { %224 = vsyncpa [#allocation4], 1 }
 0x17b   :  { %225 = vsyncpa [#allocation7], 1 }
 0x17c   :  { %226 = vsyncpa [#allocation5], 1 }

</bundles_post_ra>
